<compile_context>
chip_gen: v5e
topology: v5e:2x2
jax: 0.10.0
libtpu: 0.0.40
codegen_flags: <defaults>
</compile_context>

<pallas_src>
import jax
import jax.numpy as jnp
from jax.experimental import pallas as pl
from jax.experimental.pallas import tpu as pltpu


def _round_up(x, m):
    return (x + m - 1) // m * m


def _cdiv(a, b):
    return -(-a // b)


def critic_forward(state, action, sofa, params, *, num_nodes=32, max_tile_b=2048):
    """Equivalent of Critic.forward(state, action, sofa) -> (q1, q2)."""
    state = state.astype(jnp.float32)
    action = action.astype(jnp.float32)
    sofa = sofa.astype(jnp.float32)

    B, S = state.shape
    A = action.shape[1]
    H = num_nodes
    H2 = 2 * H
    D_IN = S + A + 1
    D_IN_PAD = _round_up(D_IN, 8)

    # ---- fused, transposed weight slab (bf16 for the MXU) -------------------
    # Row layout (transposed network: features on sublanes, batch on lanes):
    #   [0,    H2)        : W1^T (rows 0..H-1) / W4^T (rows H..2H-1), cols [0, D_IN)
    #   [H2,   2*H2)      : blockdiag(W2, W5)^T, cols [0, H2)
    #   [2*H2, 2*H2+16)   : row 0 = W3^T, row 1 = W6^T, rest zero
    W3_ROWS = 16                      # 16-row pad keeps bf16 sublane packing aligned
    W_ROWS = 2 * H2 + W3_ROWS
    W_COLS = max(D_IN_PAD, H2)
    w_slab = jnp.zeros((W_ROWS, W_COLS), jnp.float32)
    w_slab = w_slab.at[0:H, 0:D_IN].set(params["w1"].T)
    w_slab = w_slab.at[H:H2, 0:D_IN].set(params["w4"].T)
    w_slab = w_slab.at[H2:H2 + H, 0:H].set(params["w2"].T)
    w_slab = w_slab.at[H2 + H:2 * H2, H:H2].set(params["w5"].T)
    w_slab = w_slab.at[2 * H2, 0:H].set(params["w3"][:, 0])
    w_slab = w_slab.at[2 * H2 + 1, H:H2].set(params["w6"][:, 0])
    w_slab = w_slab.astype(jnp.bfloat16)          # MXU operands in bf16

    # Biases stay f32 (f32 epilogue on every generation, incl. v5e).
    # Col 0 = b1|b4, col 1 = b2|b5, col 2 rows 0/1 = b3/b6.
    b_slab = jnp.zeros((H2, 8), jnp.float32)
    b_slab = b_slab.at[0:H, 0].set(params["b1"][0]).at[H:H2, 0].set(params["b4"][0])
    b_slab = b_slab.at[0:H, 1].set(params["b2"][0]).at[H:H2, 1].set(params["b5"][0])
    b_slab = b_slab.at[0, 2].set(params["b3"][0, 0]).at[1, 2].set(params["b6"][0, 0])

    # ---- waste-aware batch tiling --------------------------------------------
    n_tiles = max(1, _cdiv(B, max_tile_b))
    if n_tiles == 1 and B > 256:
        n_tiles = 2                               # both v7x TensorCores get work
    # Lane-dense (2, TILE_B) out blocks need TILE_B % 128 == 0 when n_tiles > 1;
    # a single tile equals the full batch dim, so 8-alignment suffices.
    align = 128 if n_tiles > 1 else 8
    TILE_B = _round_up(_cdiv(B, n_tiles), align)
    B_pad = n_tiles * TILE_B

    # ---- pack layer-1 input once in the wrapper (layout plumbing, cheap) -----
    x = jnp.concatenate([state, action, sofa], axis=1)            # (B, D_IN)
    x = jnp.pad(x, ((0, B_pad - B), (0, D_IN_PAD - D_IN)))
    xT = x.T.astype(jnp.bfloat16)                                  # (D_IN_PAD, B_pad)

    def kernel(x_ref, w_ref, b_ref, q_ref):
        x_t = x_ref[...]                                           # (D_IN_PAD, TILE_B) bf16
        # layer 1: h = W1^T|W4^T @ x  (single fused dot for both heads)
        w1t = w_ref[0:H2, 0:D_IN_PAD]
        h = jnp.dot(w1t, x_t, preferred_element_type=jnp.float32)  # (H2, TILE_B) f32
        h = jnp.maximum(h + b_ref[:, 0:1], 0.0)
        # layer 2: block-diagonal (W2 + W5)^T
        w2t = w_ref[H2:2 * H2, 0:H2]
        h = jnp.dot(w2t, h.astype(jnp.bfloat16),
                    preferred_element_type=jnp.float32)
        h = jnp.maximum(h + b_ref[:, 1:2], 0.0)
        # layer 3: rows 0/1 hold W3^T / W6^T
        w3t = w_ref[2 * H2:2 * H2 + W3_ROWS, 0:H2]
        q = jnp.dot(w3t, h.astype(jnp.bfloat16),
                    preferred_element_type=jnp.float32)            # (16, TILE_B)
        q_ref[...] = (q[0:2, :] + b_ref[0:2, 2:3]).astype(q_ref.dtype)

    qT = pl.pallas_call(
        kernel,
        out_shape=jax.ShapeDtypeStruct((2, B_pad), jnp.float32),
        grid_spec=pltpu.PrefetchScalarGridSpec(
            num_scalar_prefetch=0,
            grid=(n_tiles,),
            in_specs=[
                pl.BlockSpec((D_IN_PAD, TILE_B), lambda i: (0, i)),  # packed input
                pl.BlockSpec((W_ROWS, W_COLS), lambda i: (0, 0)),    # resident weights
                pl.BlockSpec((H2, 8), lambda i: (0, 0)),             # resident biases
            ],
            out_specs=pl.BlockSpec((2, TILE_B), lambda i: (0, i)),   # lane-dense output
        ),
        compiler_params=pltpu.CompilerParams(
            dimension_semantics=("parallel",)),
    )(xT, w_slab, b_slab)

    q1 = qT[0, :B].reshape(B, 1)
    q2 = qT[1, :B].reshape(B, 1)
    return q1, q2


def init_critic_params(key, state_dim, action_dim, num_nodes=32):
    """Deterministic init mimicking PyTorch nn.Linear (uniform +/- 1/sqrt(fan_in)).

    Weights are stored as (in_features, out_features); biases as (1, out)."""
    d_in = state_dim + action_dim + 1
    dims = [
        ("w1", "b1", d_in, num_nodes),
        ("w2", "b2", num_nodes, num_nodes),
        ("w3", "b3", num_nodes, 1),
        ("w4", "b4", d_in, num_nodes),
        ("w5", "b5", num_nodes, num_nodes),
        ("w6", "b6", num_nodes, 1),
    ]
    params = {}
    for wname, bname, fin, fout in dims:
        key, kw, kb = jax.random.split(key, 3)
        bound = 1.0 / jnp.sqrt(jnp.float32(fin))
        params[wname] = jax.random.uniform(kw, (fin, fout), jnp.float32,
                                           minval=-bound, maxval=bound)
        params[bname] = jax.random.uniform(kb, (1, fout), jnp.float32,
                                           minval=-bound, maxval=bound)
    return params


def critic_reference(state, action, sofa, params):
    """Plain-JAX f32 reference of the same forward (for sanity checking)."""
    sa = jnp.concatenate([state, action, sofa], axis=1)
    h = jax.nn.relu(sa @ params["w1"] + params["b1"])
    h = jax.nn.relu(h @ params["w2"] + params["b2"])
    q1 = h @ params["w3"] + params["b3"]
    g = jax.nn.relu(sa @ params["w4"] + params["b4"])
    g = jax.nn.relu(g @ params["w5"] + params["b5"])
    q2 = g @ params["w6"] + params["b6"]
    return q1, q2


if __name__ == "__main__":
    state_dim, action_dim, num_nodes = 8, 4, 32
    batch = 2

    key = jax.random.PRNGKey(0)
    kp, ks, ka, kf = jax.random.split(key, 4)

    params = init_critic_params(kp, state_dim, action_dim, num_nodes)
    state = jax.random.normal(ks, (batch, state_dim), jnp.float32)
    action = jax.random.normal(ka, (batch, action_dim), jnp.float32)
    sofa = jax.random.normal(kf, (batch, 1), jnp.float32)

    fwd = jax.jit(lambda s, a, f, p: critic_forward(s, a, f, p,
                                                    num_nodes=num_nodes))
    q1, q2 = fwd(state, action, sofa, params)
    jax.block_until_ready((q1, q2))

    q1_ref, q2_ref = critic_reference(state, action, sofa, params)
    assert q1.shape == (batch, 1) and q2.shape == (batch, 1)
    # bf16 MXU operands (f32 accumulation) -> relaxed tolerance vs f32 reference.
    assert jnp.allclose(q1, q1_ref, atol=5e-2, rtol=5e-2), "q1 mismatch vs reference"
    assert jnp.allclose(q2, q2_ref, atol=5e-2, rtol=5e-2), "q2 mismatch vs reference"

    # Batch that needs padding and spans multiple grid steps (2 tiles -> both
    # v7x TensorCores participate via dimension_semantics=("parallel",)).
    kb1, kb2, kb3 = jax.random.split(kf, 3)
    big_state = jax.random.normal(kb1, (1030, state_dim), jnp.float32)
    big_action = jax.random.normal(kb2, (1030, action_dim), jnp.float32)
    big_sofa = jax.random.normal(kb3, (1030, 1), jnp.float32)
    bq1, bq2 = fwd(big_state, big_action, big_sofa, params)
    jax.block_until_ready((bq1, bq2))
    bq1_ref, bq2_ref = critic_reference(big_state, big_action, big_sofa, params)
    assert bq1.shape == (1030, 1) and bq2.shape == (1030, 1)
    assert jnp.allclose(bq1, bq1_ref, atol=5e-2, rtol=5e-2), "q1 mismatch (large batch)"
    assert jnp.allclose(bq2, bq2_ref, atol=5e-2, rtol=5e-2), "q2 mismatch (large batch)"

    print("KERNEL_OK")
</pallas_src>

<mosaic_0001>
module attributes {stable_mosaic.version = 11 : i64} {
  func.func @kernel(%arg0: i32, %arg1: memref<16x8xbf16, #tpu.memory_space<vmem>>, %arg2: memref<144x64xbf16, #tpu.memory_space<vmem>>, %arg3: memref<64x8xf32, #tpu.memory_space<vmem>>, %arg4: memref<2x8xf32, #tpu.memory_space<vmem>>) attributes {dimension_semantics = [#tpu.dimension_semantics<parallel>], iteration_bounds = array<i64: 1>, scalar_prefetch = 0 : i64, scratch_operands = 0 : i64, tpu.core_type = #tpu.core_type<tc>, window_params = [{transform_indices = @transform_0, window_bounds = array<i64: 16, 8>}, {pipeline_mode = #tpu.pipeline_mode<synchronous>, transform_indices = @transform_1, window_bounds = array<i64: 144, 64>}, {pipeline_mode = #tpu.pipeline_mode<synchronous>, transform_indices = @transform_2, window_bounds = array<i64: 64, 8>}, {transform_indices = @transform_3, window_bounds = array<i64: 2, 8>}]} {
    %c0 = arith.constant 0 : index
    %c0_0 = arith.constant 0 : index
    %0 = vector.load %arg1[%c0, %c0_0] : memref<16x8xbf16, #tpu.memory_space<vmem>>, vector<16x8xbf16>
    %c0_1 = arith.constant 0 : index
    %c0_2 = arith.constant 0 : index
    %1 = vector.load %arg2[%c0_1, %c0_2] : memref<144x64xbf16, #tpu.memory_space<vmem>>, vector<64x16xbf16>
    %cst = arith.constant dense<0.000000e+00> : vector<64x8xf32>
    %2 = tpu.matmul %1, %0, %cst {dimension_numbers = #tpu.dot_dimension_numbers<[1], [0], [0], [1], [0, 0, 1, 1], [], []>} : vector<64x16xbf16>, vector<16x8xbf16>, vector<64x8xf32> -> vector<64x8xf32>
    %c0_3 = arith.constant 0 : index
    %c0_4 = arith.constant 0 : index
    %3 = vector.load %arg3[%c0_3, %c0_4] : memref<64x8xf32, #tpu.memory_space<vmem>>, vector<64x1xf32>
    %4 = vector.broadcast %3 : vector<64x1xf32> to vector<64x8xf32>
    %5 = arith.addf %2, %4 : vector<64x8xf32>
    %cst_5 = arith.constant 0.000000e+00 : f32
    %6 = vector.broadcast %cst_5 : f32 to vector<64x8xf32>
    %7 = arith.maximumf %5, %6 : vector<64x8xf32>
    %c64 = arith.constant 64 : index
    %c0_6 = arith.constant 0 : index
    %8 = vector.load %arg2[%c64, %c0_6] : memref<144x64xbf16, #tpu.memory_space<vmem>>, vector<64x64xbf16>
    %9 = arith.truncf %7 : vector<64x8xf32> to vector<64x8xbf16>
    %cst_7 = arith.constant dense<0.000000e+00> : vector<64x8xf32>
    %10 = tpu.matmul %8, %9, %cst_7 {dimension_numbers = #tpu.dot_dimension_numbers<[1], [0], [0], [1], [0, 0, 1, 1], [], []>} : vector<64x64xbf16>, vector<64x8xbf16>, vector<64x8xf32> -> vector<64x8xf32>
    %c0_8 = arith.constant 0 : index
    %c1 = arith.constant 1 : index
    %11 = vector.load %arg3[%c0_8, %c1] : memref<64x8xf32, #tpu.memory_space<vmem>>, vector<64x1xf32>
    %12 = vector.broadcast %11 : vector<64x1xf32> to vector<64x8xf32>
    %13 = arith.addf %10, %12 : vector<64x8xf32>
    %cst_9 = arith.constant 0.000000e+00 : f32
    %14 = vector.broadcast %cst_9 : f32 to vector<64x8xf32>
    %15 = arith.maximumf %13, %14 : vector<64x8xf32>
    %c128 = arith.constant 128 : index
    %c0_10 = arith.constant 0 : index
    %16 = vector.load %arg2[%c128, %c0_10] : memref<144x64xbf16, #tpu.memory_space<vmem>>, vector<16x64xbf16>
    %17 = arith.truncf %15 : vector<64x8xf32> to vector<64x8xbf16>
    %cst_11 = arith.constant dense<0.000000e+00> : vector<16x8xf32>
    %18 = tpu.matmul %16, %17, %cst_11 {dimension_numbers = #tpu.dot_dimension_numbers<[1], [0], [0], [1], [0, 0, 1, 1], [], []>} : vector<16x64xbf16>, vector<64x8xbf16>, vector<16x8xf32> -> vector<16x8xf32>
    %19 = vector.extract_strided_slice %18 {offsets = [0, 0], sizes = [2, 8], strides = [1, 1]} : vector<16x8xf32> to vector<2x8xf32>
    %c0_12 = arith.constant 0 : index
    %c2 = arith.constant 2 : index
    %20 = vector.load %arg3[%c0_12, %c2] : memref<64x8xf32, #tpu.memory_space<vmem>>, vector<2x1xf32>
    %21 = vector.broadcast %20 : vector<2x1xf32> to vector<2x8xf32>
    %22 = arith.addf %19, %21 : vector<2x8xf32>
    %c0_13 = arith.constant 0 : index
    %c0_14 = arith.constant 0 : index
    %23 = vector.load %arg4[%c0_13, %c0_14] : memref<2x8xf32, #tpu.memory_space<vmem>>, vector<2x8xf32>
    tpu.vector_store %arg4[%c0_13, %c0_14], %22 {strides = array<i32>} : memref<2x8xf32, #tpu.memory_space<vmem>>, vector<2x8xf32>,
    return
  }
  func.func @transform_0(%arg0: i32) -> (i32, i32) {
    %c0_i32 = arith.constant 0 : i32
    %c0_i32_0 = arith.constant 0 : i32
    return %c0_i32, %arg0 : i32, i32
  }
  func.func @transform_1(%arg0: i32) -> (i32, i32) {
    %c0_i32 = arith.constant 0 : i32
    %c0_i32_0 = arith.constant 0 : i32
    %c0_i32_1 = arith.constant 0 : i32
    return %c0_i32, %c0_i32_0 : i32, i32
  }
  func.func @transform_2(%arg0: i32) -> (i32, i32) {
    %c0_i32 = arith.constant 0 : i32
    %c0_i32_0 = arith.constant 0 : i32
    %c0_i32_1 = arith.constant 0 : i32
    return %c0_i32, %c0_i32_0 : i32, i32
  }
  func.func @transform_3(%arg0: i32) -> (i32, i32) {
    %c0_i32 = arith.constant 0 : i32
    %c0_i32_0 = arith.constant 0 : i32
    return %c0_i32, %arg0 : i32, i32
  }
}

</mosaic_0001>

<bundles_post_ra>
// kernel: _lambda_.1
= control target key start
LH: loop header
LB: loop body
LE: loop exit
PB: predicated region body
PF: predicated region fallthrough
CT: control target
= control target key end

     0   :  { %v382_v0 = vmov 0   ;;  %vm99_vm0 = vcmask 130048   ;;  %v383_v29 = vmov 1   ;;  %vm213_vm1 = vcmask 523264   ;;  %s474_s2 = inlined_call_operand.vmem [shape: f32[64,8], index: 2, kind: input, shape index: {}]   ;;  %s475_s0 = inlined_call_operand.vmem [shape: bf16[16,8], index: 0, kind: input, shape index: {}]   ;;  %s476_s1 = inlined_call_operand.vmem [shape: bf16[144,64], index: 1, kind: input, shape index: {}]   ;;  %s477_s3 = inlined_call_operand.vmem [shape: f32[2,8], index: 3, kind: output, shape index: {}]  }
   0x1   :  { %374 = vset.pattern.permute.xlu0 %v382_v0  ;;  %v31_v1 = vld [vmem:[%s474_s2 + $0x30] sm:$0xff]  ;;  %v352_v2 = vld [vmem:[%s475_s0] sm:$0xff]  ;;  %375 = vset.pattern.permute.xlu1 %v382_v0  ;;  %v356_v5 = vld [vmem:[%s476_s1 + $0x18] sm:$0xff]  ;;  %v384_v61 = vmov 2   ;;  %vm297_vm2 = vcmask 58368  }
   0x2   :  { %65 = vperm.xlu0 %374, %v31_v1   ;;  %v353_v3 = vld [vmem:[%s476_s1] sm:$0xff]  ;;  %376 = vset.pattern.permute.xlu2 %v382_v0  ;;  %v27_v6 = vld [vmem:[%s474_s2 + $0x10] sm:$0xff]  ;;  %v32_v7 = vld [vmem:[%s474_s2 + $0x38] sm:$0xff] }
   0x3   :  { %v29_v4 = vld [vmem:[%s474_s2 + $0x20] sm:$0xff]  ;;  %119 = vmatpush.bf16.msra.mxu0 %v352_v2  ;;  %362 = vmatpush.bf16.msra.mxu1 %v352_v2  ;;  %v30_v8 = vld [vmem:[%s474_s2 + $0x28] sm:$0xff]  ;;  %v28_v9 = vld [vmem:[%s474_s2 + $0x18] sm:$0xff] }
   0x4   :  { %55 = vperm.xlu1 %375, %v29_v4   ;;  %45 = vperm.xlu2 %376, %v27_v6   ;;  %v25_v10 = vld [vmem:[%s474_s2] sm:$0xff]  ;;  %v26_v11 = vld [vmem:[%s474_s2 + $0x8] sm:$0xff]  ;;  %v355_v13 = vld [vmem:[%s476_s1 + $0x10] sm:$0xff] }
   0x5   :  { %v354_v12 = vld [vmem:[%s476_s1 + $0x8] sm:$0xff]  ;;  %v357_v52 = vld [vmem:[%s476_s1 + $0x20] sm:$0xff]  ;;  %v359_v53 = vld [vmem:[%s476_s1 + $0x30] sm:$0xff] }
   0x6   :  { %323 = vmatmul.msk.bf16.vlgmr.msra.gmra.mxu0 %vm99_vm0, %v353_v3  ;;  %326 = vmatmul.msk.bf16.vlgmr.msra.gmra.mxu1 %vm99_vm0, %v356_v5  ;;  %v358_v51 = vld [vmem:[%s476_s1 + $0x28] sm:$0xff]  ;;  %v360_v54 = vld [vmem:[%s476_s1 + $0x38] sm:$0xff]  ;;  %v290_v59 = vld [vmem:[%s474_s2] sm:$0x3] }
   0xa   :  { %70 = vperm.xlu0 %374, %v32_v7  }
   0xc   :  { %60 = vperm.xlu1 %375, %v30_v8   ;;  %50 = vperm.xlu2 %376, %v28_v9  }
  0x12   :  { %35 = vperm.xlu0 %374, %v25_v10  }
  0x14   :  { %40 = vperm.xlu1 %375, %v26_v11   ;;  %377 = vset.pattern.permute.xlu2 %v383_v29 }
  0x15   :  { %186 = vperm.xlu2 %377, %v31_v1  }
  0x16   :  { %324 = vmatmul.msk.bf16.gmra.mxu0 %vm99_vm0, %v354_v12 }
  0x1a   :  { %378 = vset.pattern.permute.xlu0 %v383_v29 }
  0x1b   :  { %190 = vperm.xlu0 %378, %v32_v7  }
  0x1c   :  { %379 = vset.pattern.permute.xlu1 %v383_v29  ;;  %v361_v29 = vld [vmem:[%s476_s1 + $0x40] sm:$0xff] }
  0x1d   :  { %178 = vperm.xlu1 %379, %v29_v4   ;;  %182 = vperm.xlu2 %377, %v30_v8  }
  0x23   :  { %162 = vperm.xlu0 %378, %v25_v10  }
  0x25   :  { %170 = vperm.xlu1 %379, %v27_v6   ;;  %174 = vperm.xlu2 %377, %v28_v9  }
  0x26   :  { %325 = vmatmul.msk.bf16.gmra.mxu0 %vm99_vm0, %v355_v13 }
  0x2b   :  { %381 = vset.pattern.permute.xlu0 %v384_v61 }
  0x2d   :  { %166 = vperm.xlu1 %379, %v26_v11   ;;  %380 = vset.pattern.permute.xlu2 %v384_v61 }
  0x2e   :  { %293 = vperm.xlu2 %380, %v290_v59  }
  0x5e   :  { %v46_v28 = vpop.permute.xlu2 %45 }
  0x66   :  { %v51_v32 = vpop.permute.xlu2 %50 }
  0x6f   :  { %v187_v56 = vpop.permute.xlu2 %186 }
  0x74   :  { %v66_v14 = vpop.permute.xlu0 %65 }
  0x76   :  { %v56_v26 = vpop.permute.xlu1 %55 }
  0x77   :  { %v183_v60 = vpop.permute.xlu2 %182 }
  0x7c   :  { %v71_v19 = vpop.permute.xlu0 %70 }
  0x7e   :  { %v61_v30 = vpop.permute.xlu1 %60 }
  0x7f   :  { %v175_v7 = vpop.permute.xlu2 %174 }
  0x83   :  { %v121_v15 = vpop.f32.mrf.mxu0  ;;  %v136_v16 = vpop.f32.mrf.mxu1 }
  0x84   :  { %v137_v17 = vadd.f32 %v136_v16, %v66_v14  ;;  %v36_v41 = vpop.permute.xlu0 %35 }
  0x85   :  { %v122_v45 = vadd.f32 %v121_v15, %v36_v41 }
  0x86   :  { %v147_v21 = vmax.f32 %v137_v17, 0.0  ;;  %v41_v37 = vpop.permute.xlu1 %40 }
  0x87   :  { %v141_v49 = vmax.f32 %v122_v45, 0.0 }
  0x8b   :  { %v123_v18 = vpop.f32.mrf.mxu0  ;;  %v138_v20 = vpop.f32.mrf.mxu1 }
  0x8c   :  { %v139_v22 = vadd.f32 %v138_v20, %v71_v19  ;;  %v124_v42 = vadd.f32 %v123_v18, %v41_v37 }
  0x8d   :  { %v191_v0 = vpop.permute.xlu0 %190 }
  0x8e   :  { %v148_v23 = vmax.f32 %v139_v22, 0.0  ;;  %v142_v47 = vmax.f32 %v124_v42, 0.0 }
  0x8f   :  { %v179_v58 = vpop.permute.xlu1 %178 }
  0x90   :  { %v160_v24 = vpack.c.bf16 %v148_v23, %v147_v21  ;;  %v157_v50 = vpack.c.bf16 %v142_v47, %v141_v49 }
  0x92   :  { %230 = vmatpush.bf16.msrb.mxu1 %v160_v24  ;;  %363 = vmatpush.bf16.msra.mxu2 %v160_v24 }
  0x93   :  { %v126_v25 = vpop.f32.mrf.mxu0  ;;  %364 = vmatpush.bf16.msra.mxu3 %v160_v24 }
  0x94   :  { %v127_v38 = vadd.f32 %v126_v25, %v46_v28 }
  0x95   :  { %v163_v15 = vpop.permute.xlu0 %162 }
  0x96   :  { %v143_v46 = vmax.f32 %v127_v38, 0.0 }
  0x97   :  { %v171_v1 = vpop.permute.xlu1 %170 }
  0x9b   :  { %v128_v27 = vpop.f32.mrf.mxu0 }
  0x9c   :  { %v129_v35 = vadd.f32 %v128_v27, %v51_v32 }
  0x9e   :  { %v144_v43 = vmax.f32 %v129_v35, 0.0 }
  0x9f   :  { %v167_v17 = vpop.permute.xlu1 %166 }
  0xa0   :  { %v158_v48 = vpack.c.bf16 %v144_v43, %v143_v46 }
  0xa3   :  { %v131_v31 = vpop.f32.mrf.mxu0 }
  0xa4   :  { %v132_v33 = vadd.f32 %v131_v31, %v56_v26 }
  0xa6   :  { %v145_v39 = vmax.f32 %v132_v33, 0.0 }
  0xab   :  { %v133_v34 = vpop.f32.mrf.mxu0 }
  0xac   :  { %v134_v36 = vadd.f32 %v133_v34, %v61_v30  ;;  %v294_v30 = vpop.permute.xlu2 %293 }
  0xae   :  { %v146_v40 = vmax.f32 %v134_v36, 0.0 }
  0xb0   :  { %v159_v44 = vpack.c.bf16 %v146_v40, %v145_v39 }
  0xb2   :  { %231 = vmatpush.bf16.msrb.mxu1 %v159_v44  ;;  %365 = vmatpush.bf16.msra.mxu2 %v159_v44 }
  0xb3   :  { %366 = vmatpush.bf16.msra.mxu3 %v159_v44 }
  0xb6   :  { %232 = vmatpush.bf16.msrb.mxu1 %v158_v48  ;;  %367 = vmatpush.bf16.msra.mxu2 %v158_v48 }
  0xb7   :  { %368 = vmatpush.bf16.msra.mxu3 %v158_v48 }
  0xba   :  { %233 = vmatpush.bf16.msrb.mxu1 %v157_v50  ;;  %369 = vmatpush.bf16.msra.mxu2 %v157_v50 }
  0xbb   :  { %370 = vmatpush.bf16.msra.mxu3 %v157_v50 }
  0xbd   :  { %344 = vmatmul.msk.bf16.vlgmr.msra.gmra.mxu2 %vm213_vm1, %v358_v51  ;;  %343 = vmatmul.msk.bf16.vlgmr.msrb.gmra.mxu1 %vm213_vm1, %v357_v52 }
  0xbe   :  { %345 = vmatmul.msk.bf16.vlgmr.msra.gmra.mxu3 %vm213_vm1, %v359_v53 }
  0xce   :  { %346 = vmatmul.msk.bf16.gmra.mxu3 %vm213_vm1, %v360_v54 }
 0x13a   :  { %v235_v2 = vpop.f32.mrf.mxu1 }
 0x13b   :  { %v236_v20 = vadd.f32 %v235_v2, %v163_v15 }
 0x13d   :  { %v255_v25 = vmax.f32 %v236_v20, 0.0 }
 0x140   :  { %v240_v62 = vpop.f32.mrf.mxu2 }
 0x141   :  { %v245_v55 = vpop.f32.mrf.mxu3  ;;  %v241_v13 = vadd.f32 %v240_v62, %v171_v1 }
 0x142   :  { %v246_v9 = vadd.f32 %v245_v55, %v179_v58  ;;  %v237_v18 = vpop.f32.mrf.mxu1 }
 0x143   :  { %v257_v21 = vmax.f32 %v241_v13, 0.0  ;;  %v238_v23 = vadd.f32 %v237_v18, %v167_v17 }
 0x144   :  { %v259_v19 = vmax.f32 %v246_v9, 0.0 }
 0x145   :  { %v256_v26 = vmax.f32 %v238_v23, 0.0 }
 0x147   :  { %v265_v28 = vpack.c.bf16 %v256_v26, %v255_v25 }
 0x148   :  { %v242_v8 = vpop.f32.mrf.mxu2 }
 0x149   :  { %v247_v57 = vpop.f32.mrf.mxu3  ;;  %v243_v14 = vadd.f32 %v242_v8, %v175_v7 }
 0x14a   :  { %v248_v5 = vadd.f32 %v247_v57, %v183_v60 }
 0x14b   :  { %v258_v22 = vmax.f32 %v243_v14, 0.0 }
 0x14c   :  { %v260_v12 = vmax.f32 %v248_v5, 0.0 }
 0x14d   :  { %v266_v27 = vpack.c.bf16 %v258_v22, %v257_v21 }
 0x14e   :  { %v267_v24 = vpack.c.bf16 %v260_v12, %v259_v19 }
 0x151   :  { %v250_v63 = vpop.f32.mrf.mxu3 }
 0x152   :  { %v251_v3 = vadd.f32 %v250_v63, %v187_v56 }
 0x154   :  { %v261_v10 = vmax.f32 %v251_v3, 0.0 }
 0x159   :  { %v252_v4 = vpop.f32.mrf.mxu3 }
 0x15a   :  { %v253_v6 = vadd.f32 %v252_v4, %v191_v0 }
 0x15c   :  { %v262_v11 = vmax.f32 %v253_v6, 0.0 }
 0x15e   :  { %v268_v16 = vpack.c.bf16 %v262_v11, %v261_v10 }
 0x160   :  { %281 = vmatpush.bf16.msrb.mxu2 %v268_v16 }
 0x164   :  { %282 = vmatpush.bf16.msrb.mxu2 %v267_v24 }
 0x168   :  { %283 = vmatpush.bf16.msrb.mxu2 %v266_v27 }
 0x16c   :  { %284 = vmatpush.bf16.msrb.mxu2 %v265_v28 }
 0x16f   :  { %351 = vmatmul.msk.bf16.vlgmr.msrb.gmra.mxu2 %vm213_vm1, %v361_v29 }
 0x1f2   :  { %v286_v31 = vpop.f32.mrf.mxu2 }
 0x1f3   :  { %v296_v32 = vadd.f32 %v294_v30, %v286_v31 }
 0x1f5   :  { %298 = vst.msk [vmem:[%s477_s3] sm:$0x3] %vm297_vm2, %v296_v32 }
 0x1fa   :  { %v288_v33 = vpop.f32.mrf.mxu2 }

</bundles_post_ra>
